<compile_context>
chip_gen: v6e
topology: v6e:2x2x1
jax: 0.10.0
libtpu: 0.0.40
codegen_flags: <defaults>
</compile_context>

<pallas_src>
import jax
import jax.numpy as jnp
from jax.experimental import pallas as pl
from jax.experimental.pallas import tpu as pltpu

_LANE = 128
_BATCH_ALIGN = 16      # bf16 sublane packing
_MAX_TB = 256          # v5e-friendly cap (fp32 intermediates stay in vregs)


def _round_up(x, m):
    return ((x + m - 1) // m) * m


def _pad2d(x, rows, cols):
    r, c = x.shape
    if (r, c) == (rows, cols):
        return x
    return jnp.pad(x, ((0, rows - r), (0, cols - c)))


def _actor_kernel(x_ref, w1_ref, b1_ref, w2_ref, b2_ref, w3_ref, b3_ref, o_ref):
    # fp32 state -> bf16 MXU operand (VPU cast, hidden under the MXU).
    x = x_ref[...].astype(w1_ref.dtype)
    # fc1 + relu: bf16 operands, fp32 accumulation / elementwise.
    h1 = jnp.dot(x, w1_ref[...], preferred_element_type=jnp.float32)
    h1 = jnp.maximum(h1 + b1_ref[...], 0.0)
    # fc2 + relu
    h2 = jnp.dot(h1.astype(w2_ref.dtype), w2_ref[...],
                 preferred_element_type=jnp.float32)
    h2 = jnp.maximum(h2 + b2_ref[...], 0.0)
    # pi head: logits; only the n_actions columns are computed and stored.
    pi = jnp.dot(h2.astype(w3_ref.dtype), w3_ref[...],
                 preferred_element_type=jnp.float32) + b3_ref[...]
    o_ref[...] = pi.astype(o_ref.dtype)


def prepare_params(params, compute_dtype=jnp.bfloat16):
    """One-time weight prep (hoisted out of the per-call path).

    Transposes PyTorch-convention weights to (in, out), zero-pads hidden dims
    to lane multiples (exact: padded units have zero in/out weights and zero
    bias), casts matmul operands to `compute_dtype`. The action dim is left
    narrow so the kernel's output block equals the full (unpadded) array.
    Biases stay fp32.
    """
    w1, b1 = params["fc1.weight"], params["fc1.bias"]   # (H1, D), (H1,)
    w2, b2 = params["fc2.weight"], params["fc2.bias"]   # (H2, H1), (H2,)
    w3, b3 = params["pi.weight"], params["pi.bias"]     # (A, H2), (A,)

    D = w1.shape[1]
    H1, H2, A = w1.shape[0], w2.shape[0], w3.shape[0]
    H1p = _round_up(H1, _LANE)
    H2p = _round_up(H2, _LANE)

    return {
        "w1": _pad2d(w1.T.astype(compute_dtype), D, H1p),        # (D, H1p)
        "b1": _pad2d(b1.astype(jnp.float32)[None, :], 1, H1p),   # (1, H1p)
        "w2": _pad2d(w2.T.astype(compute_dtype), H1p, H2p),      # (H1p, H2p)
        "b2": _pad2d(b2.astype(jnp.float32)[None, :], 1, H2p),   # (1, H2p)
        "w3": _pad2d(w3.T.astype(compute_dtype), H2p, A),        # (H2p, A)
        "b3": b3.astype(jnp.float32)[None, :],                   # (1, A)
    }


def _pick_batch_tile(B):
    """Batch tile: >=2 grid steps once B >= 32 (v7x megacore), capped at 256
    (v5e spill pressure), multiple of 16 (bf16 packing), minimal padding."""
    if B < 32:
        return _round_up(B, _BATCH_ALIGN)
    n_steps = max(2, pl.cdiv(B, _MAX_TB))
    return _round_up(pl.cdiv(B, n_steps), _BATCH_ALIGN)


@jax.jit
def actor_forward(state, prepped):
    """state: [B, input_dim] float32. prepped: output of prepare_params.

    Returns logits pi: [B, n_actions] float32.
    """
    w1, b1 = prepped["w1"], prepped["b1"]
    w2, b2 = prepped["w2"], prepped["b2"]
    w3, b3 = prepped["w3"], prepped["b3"]

    B, D = state.shape
    assert w1.shape[0] == D, (w1.shape, D)
    H1p, H2p, A = w1.shape[1], w2.shape[1], w3.shape[1]

    TB = _pick_batch_tile(B)
    Bp = _round_up(B, TB)
    # Pad rows only if needed (static check) -> no extra XLA op at aligned B.
    x = state if Bp == B else jnp.pad(state, ((0, Bp - B), (0, 0)))

    const = lambda shape: pl.BlockSpec(shape, lambda i: (0, 0))

    out = pl.pallas_call(
        _actor_kernel,
        out_shape=jax.ShapeDtypeStruct((Bp, A), jnp.float32),
        grid_spec=pltpu.PrefetchScalarGridSpec(
            num_scalar_prefetch=0,
            grid=(Bp // TB,),
            in_specs=[
                pl.BlockSpec((TB, D), lambda i: (i, 0)),  # state: batch-tiled
                const((D, H1p)),                          # weights/biases stay
                const((1, H1p)),                          # VMEM-resident
                const((H1p, H2p)),
                const((1, H2p)),
                const((H2p, A)),
                const((1, A)),
            ],
            # Narrow, unpadded logits block (last dim == full array dim).
            out_specs=pl.BlockSpec((TB, A), lambda i: (i, 0)),
        ),
        compiler_params=pltpu.CompilerParams(
            dimension_semantics=("parallel",),
        ),
    )(x, w1, b1, w2, b2, w3, b3)

    # Row slice only when batch padding was actually added.
    return out if Bp == B else out[:B]


def init_params(key, input_dim, n_actions, fc1_dims=128, fc2_dims=128):
    """Deterministic init mimicking nn.Linear default (uniform +/- 1/sqrt(fan_in))."""
    ks = jax.random.split(key, 6)

    def linear(kw, kb, fan_in, fan_out):
        bound = 1.0 / jnp.sqrt(fan_in)
        w = jax.random.uniform(kw, (fan_out, fan_in), jnp.float32, -bound, bound)
        b = jax.random.uniform(kb, (fan_out,), jnp.float32, -bound, bound)
        return w, b

    w1, b1 = linear(ks[0], ks[1], input_dim, fc1_dims)
    w2, b2 = linear(ks[2], ks[3], fc1_dims, fc2_dims)
    w3, b3 = linear(ks[4], ks[5], fc2_dims, n_actions)
    return {
        "fc1.weight": w1, "fc1.bias": b1,
        "fc2.weight": w2, "fc2.bias": b2,
        "pi.weight": w3, "pi.bias": b3,
    }


def _reference(state, params, matmul_dtype=jnp.float32):
    """Pure-JAX forward. With matmul_dtype=bfloat16 it mirrors the kernel's
    numerics (bf16 matmul operands, fp32 accumulation + bias/ReLU)."""
    cast = lambda a: a.astype(matmul_dtype).astype(jnp.float32)
    relu = lambda v: jnp.maximum(v, 0.0)
    x = relu(cast(state) @ cast(params["fc1.weight"]).T + params["fc1.bias"])
    x = relu(cast(x) @ cast(params["fc2.weight"]).T + params["fc2.bias"])
    return cast(x) @ cast(params["pi.weight"]).T + params["pi.bias"]


if __name__ == "__main__":
    # LunarLander-v2 discrete: observation dim 8, 4 actions.
    INPUT_DIM = 8
    N_ACTIONS = 4
    BATCH = 2

    key = jax.random.PRNGKey(0)
    k_state, k_params, k_state2 = jax.random.split(key, 3)
    params = init_params(k_params, INPUT_DIM, N_ACTIONS)
    prepped = prepare_params(params)            # one-time weight prep (hoisted)

    # Small RL-style batch (grid = (1,), row padding path).
    state = jax.random.normal(k_state, (BATCH, INPUT_DIM), dtype=jnp.float32)
    pi = jax.block_until_ready(actor_forward(state, prepped))
    assert pi.shape == (BATCH, N_ACTIONS), pi.shape
    ref_mirror = _reference(state, params, jnp.bfloat16)
    assert jnp.allclose(pi, ref_mirror, atol=1e-2, rtol=1e-2), (pi, ref_mirror)
    ref_fp32 = _reference(state, params, jnp.float32)
    assert jnp.allclose(pi, ref_fp32, atol=1e-1, rtol=1e-1), (pi, ref_fp32)

    # Larger batch exercising the multi-step grid / megacore path (TB=32, grid=(2,)).
    state2 = jax.random.normal(k_state2, (40, INPUT_DIM), dtype=jnp.float32)
    pi2 = jax.block_until_ready(actor_forward(state2, prepped))
    assert pi2.shape == (40, N_ACTIONS), pi2.shape
    ref2 = _reference(state2, params, jnp.bfloat16)
    assert jnp.allclose(pi2, ref2, atol=1e-2, rtol=1e-2), (pi2, ref2)

    print("KERNEL_OK")
</pallas_src>

<mosaic_0001>
module attributes {stable_mosaic.version = 11 : i64} {
  func.func @_actor_kernel(%arg0: i32, %arg1: memref<16x8xf32, #tpu.memory_space<vmem>>, %arg2: memref<8x128xbf16, #tpu.memory_space<vmem>>, %arg3: memref<1x128xf32, #tpu.memory_space<vmem>>, %arg4: memref<128x128xbf16, #tpu.memory_space<vmem>>, %arg5: memref<1x128xf32, #tpu.memory_space<vmem>>, %arg6: memref<128x4xbf16, #tpu.memory_space<vmem>>, %arg7: memref<1x4xf32, #tpu.memory_space<vmem>>, %arg8: memref<16x4xf32, #tpu.memory_space<vmem>>) attributes {dimension_semantics = [#tpu.dimension_semantics<parallel>], iteration_bounds = array<i64: 1>, scalar_prefetch = 0 : i64, scratch_operands = 0 : i64, tpu.core_type = #tpu.core_type<tc>, window_params = [{transform_indices = @transform_0, window_bounds = array<i64: 16, 8>}, {pipeline_mode = #tpu.pipeline_mode<synchronous>, transform_indices = @transform_1, window_bounds = array<i64: 8, 128>}, {pipeline_mode = #tpu.pipeline_mode<synchronous>, transform_indices = @transform_2, window_bounds = array<i64: 1, 128>}, {pipeline_mode = #tpu.pipeline_mode<synchronous>, transform_indices = @transform_3, window_bounds = array<i64: 128, 128>}, {pipeline_mode = #tpu.pipeline_mode<synchronous>, transform_indices = @transform_4, window_bounds = array<i64: 1, 128>}, {pipeline_mode = #tpu.pipeline_mode<synchronous>, transform_indices = @transform_5, window_bounds = array<i64: 128, 4>}, {pipeline_mode = #tpu.pipeline_mode<synchronous>, transform_indices = @transform_6, window_bounds = array<i64: 1, 4>}, {transform_indices = @transform_7, window_bounds = array<i64: 16, 4>}]} {
    %c0 = arith.constant 0 : index
    %c0_0 = arith.constant 0 : index
    %0 = vector.load %arg1[%c0, %c0_0] : memref<16x8xf32, #tpu.memory_space<vmem>>, vector<16x8xf32>
    %1 = arith.truncf %0 : vector<16x8xf32> to vector<16x8xbf16>
    %c0_1 = arith.constant 0 : index
    %c0_2 = arith.constant 0 : index
    %2 = vector.load %arg2[%c0_1, %c0_2] : memref<8x128xbf16, #tpu.memory_space<vmem>>, vector<8x128xbf16>
    %cst = arith.constant dense<0.000000e+00> : vector<16x128xf32>
    %3 = tpu.matmul %1, %2, %cst {dimension_numbers = #tpu.dot_dimension_numbers<[1], [0], [0], [1], [0, 0, 1, 1], [], []>} : vector<16x8xbf16>, vector<8x128xbf16>, vector<16x128xf32> -> vector<16x128xf32>
    %c0_3 = arith.constant 0 : index
    %c0_4 = arith.constant 0 : index
    %4 = vector.load %arg3[%c0_3, %c0_4] : memref<1x128xf32, #tpu.memory_space<vmem>>, vector<1x128xf32>
    %5 = vector.broadcast %4 : vector<1x128xf32> to vector<16x128xf32>
    %6 = arith.addf %3, %5 : vector<16x128xf32>
    %cst_5 = arith.constant 0.000000e+00 : f32
    %7 = vector.broadcast %cst_5 : f32 to vector<16x128xf32>
    %8 = arith.maximumf %6, %7 : vector<16x128xf32>
    %9 = arith.truncf %8 : vector<16x128xf32> to vector<16x128xbf16>
    %c0_6 = arith.constant 0 : index
    %c0_7 = arith.constant 0 : index
    %10 = vector.load %arg4[%c0_6, %c0_7] : memref<128x128xbf16, #tpu.memory_space<vmem>>, vector<128x128xbf16>
    %cst_8 = arith.constant dense<0.000000e+00> : vector<16x128xf32>
    %11 = tpu.matmul %9, %10, %cst_8 {dimension_numbers = #tpu.dot_dimension_numbers<[1], [0], [0], [1], [0, 0, 1, 1], [], []>} : vector<16x128xbf16>, vector<128x128xbf16>, vector<16x128xf32> -> vector<16x128xf32>
    %c0_9 = arith.constant 0 : index
    %c0_10 = arith.constant 0 : index
    %12 = vector.load %arg5[%c0_9, %c0_10] : memref<1x128xf32, #tpu.memory_space<vmem>>, vector<1x128xf32>
    %13 = vector.broadcast %12 : vector<1x128xf32> to vector<16x128xf32>
    %14 = arith.addf %11, %13 : vector<16x128xf32>
    %cst_11 = arith.constant 0.000000e+00 : f32
    %15 = vector.broadcast %cst_11 : f32 to vector<16x128xf32>
    %16 = arith.maximumf %14, %15 : vector<16x128xf32>
    %17 = arith.truncf %16 : vector<16x128xf32> to vector<16x128xbf16>
    %c0_12 = arith.constant 0 : index
    %c0_13 = arith.constant 0 : index
    %18 = vector.load %arg6[%c0_12, %c0_13] : memref<128x4xbf16, #tpu.memory_space<vmem>>, vector<128x4xbf16>
    %cst_14 = arith.constant dense<0.000000e+00> : vector<16x4xf32>
    %19 = tpu.matmul %17, %18, %cst_14 {dimension_numbers = #tpu.dot_dimension_numbers<[1], [0], [0], [1], [0, 0, 1, 1], [], []>} : vector<16x128xbf16>, vector<128x4xbf16>, vector<16x4xf32> -> vector<16x4xf32>
    %c0_15 = arith.constant 0 : index
    %c0_16 = arith.constant 0 : index
    %20 = vector.load %arg7[%c0_15, %c0_16] : memref<1x4xf32, #tpu.memory_space<vmem>>, vector<1x4xf32>
    %21 = vector.broadcast %20 : vector<1x4xf32> to vector<16x4xf32>
    %22 = arith.addf %19, %21 : vector<16x4xf32>
    %c0_17 = arith.constant 0 : index
    %c0_18 = arith.constant 0 : index
    %23 = vector.load %arg8[%c0_17, %c0_18] : memref<16x4xf32, #tpu.memory_space<vmem>>, vector<16x4xf32>
    tpu.vector_store %arg8[%c0_17, %c0_18], %22 {strides = array<i32>} : memref<16x4xf32, #tpu.memory_space<vmem>>, vector<16x4xf32>,
    return
  }
  func.func @transform_0(%arg0: i32) -> (i32, i32) {
    %c0_i32 = arith.constant 0 : i32
    %c0_i32_0 = arith.constant 0 : i32
    return %arg0, %c0_i32 : i32, i32
  }
  func.func @transform_1(%arg0: i32) -> (i32, i32) {
    %c0_i32 = arith.constant 0 : i32
    %c0_i32_0 = arith.constant 0 : i32
    %c0_i32_1 = arith.constant 0 : i32
    return %c0_i32, %c0_i32_0 : i32, i32
  }
  func.func @transform_2(%arg0: i32) -> (i32, i32) {
    %c0_i32 = arith.constant 0 : i32
    %c0_i32_0 = arith.constant 0 : i32
    %c0_i32_1 = arith.constant 0 : i32
    return %c0_i32, %c0_i32_0 : i32, i32
  }
  func.func @transform_3(%arg0: i32) -> (i32, i32) {
    %c0_i32 = arith.constant 0 : i32
    %c0_i32_0 = arith.constant 0 : i32
    %c0_i32_1 = arith.constant 0 : i32
    return %c0_i32, %c0_i32_0 : i32, i32
  }
  func.func @transform_4(%arg0: i32) -> (i32, i32) {
    %c0_i32 = arith.constant 0 : i32
    %c0_i32_0 = arith.constant 0 : i32
    %c0_i32_1 = arith.constant 0 : i32
    return %c0_i32, %c0_i32_0 : i32, i32
  }
  func.func @transform_5(%arg0: i32) -> (i32, i32) {
    %c0_i32 = arith.constant 0 : i32
    %c0_i32_0 = arith.constant 0 : i32
    %c0_i32_1 = arith.constant 0 : i32
    return %c0_i32, %c0_i32_0 : i32, i32
  }
  func.func @transform_6(%arg0: i32) -> (i32, i32) {
    %c0_i32 = arith.constant 0 : i32
    %c0_i32_0 = arith.constant 0 : i32
    %c0_i32_1 = arith.constant 0 : i32
    return %c0_i32, %c0_i32_0 : i32, i32
  }
  func.func @transform_7(%arg0: i32) -> (i32, i32) {
    %c0_i32 = arith.constant 0 : i32
    %c0_i32_0 = arith.constant 0 : i32
    return %arg0, %c0_i32 : i32, i32
  }
}

</mosaic_0001>

<bundles_post_ra>
// kernel: actor_forward.1
= control target key start
LH: loop header
LB: loop body
LE: loop exit
PB: predicated region body
PF: predicated region fallthrough
CT: control target
= control target key end

     0   :  { %vm42_vm0 = vcmask 1043456   ;;  %v428_v0 = vmov 0.0   ;;  %vm429_vm1 = vmmov 0   ;;  %vm38_vm2 = vcmask 64512   ;;  %s565_s1 = inlined_call_operand.vmem [shape: bf16[8,128], index: 1, kind: input, shape index: {}]   ;;  %s566_s0 = inlined_call_operand.vmem [shape: f32[16,8], index: 0, kind: input, shape index: {}]   ;;  %s567_s3 = inlined_call_operand.vmem [shape: bf16[128,128], index: 3, kind: input, shape index: {}]   ;;  %s568_s5 = inlined_call_operand.vmem [shape: bf16[128,4], index: 5, kind: input, shape index: {}]   ;;  %s569_s2 = inlined_call_operand.vmem [shape: f32[1,128], index: 2, kind: input, shape index: {}]   ;;  %s570_s4 = inlined_call_operand.vmem [shape: f32[1,128], index: 4, kind: input, shape index: {}]   ;;  %s571_s6 = inlined_call_operand.vmem [shape: f32[1,4], index: 6, kind: input, shape index: {}]   ;;  %s572_s7 = inlined_call_operand.vmem [shape: f32[16,4], index: 7, kind: output, shape index: {}]  }
   0x1   :  { %364 = vmatprep.subr.bf16.mxu0 %v428_v0  ;;  %v30_v1 = vld [vmem:[%s565_s1] sm:$0xf]  ;;  %366 = vmatprep.mubr.msk.bf16.mxu0 %vm429_vm1, %v428_v0  ;;  %v28_v3 = vld [vmem:[%s566_s0 + $0x8] sm:$0xff]  ;;  %v412_v6 = vld [vmem:[%s567_s3 + $0x38] sm:$0xff]   ;;  %vm317_vm3 = vcmask 31744  }
   0x2   :  { %v27_v2 = vld [vmem:[%s566_s0] sm:$0xff]  ;;  %v44_v4 = vsel %vm42_vm0, %v30_v1, 0  ;;  %370 = vmatprep.subr.bf16.mxu1 %v428_v0  ;;  %386 = vmatprep.mubr.msk.bf16.mxu1 %vm429_vm1, %v428_v0  ;;  %v413_v7 = vld [vmem:[%s567_s3 + $0x30] sm:$0xff]   ;;  %v414_v8 = vld [vmem:[%s567_s3 + $0x28] sm:$0xff]  }
   0x3   :  { %v29_v5 = vpack.c.bf16 %v28_v3, %v27_v2  ;;  %365 = vmatpush3.bf16.msra.mxu0 %v44_v4  ;;  %371 = vmatpush3.bf16.msra.mxu1 %v412_v6  ;;  %v415_v9 = vld [vmem:[%s567_s3 + $0x20] sm:$0xff]   ;;  %v416_v10 = vld [vmem:[%s567_s3 + $0x18] sm:$0xff]   ;;  %v417_v11 = vld [vmem:[%s567_s3 + $0x10] sm:$0xff]  }
   0x4   :  { %390 = vmatprep.subr.bf16.mxu0 %v428_v0  ;;  %372 = vmatprep.subr.bf16.mxu1 %v428_v0  ;;  %v418_v12 = vld [vmem:[%s567_s3 + $0x8] sm:$0xff]   ;;  %v419_v13 = vld [vmem:[%s567_s3] sm:$0xff]   ;;  %v420_v14 = vld [vmem:[%s568_s5 + $0x38] sm:$0xff]  }
   0x5   :  { %v421_v15 = vld [vmem:[%s568_s5 + $0x30] sm:$0xff]   ;;  %v422_v16 = vld [vmem:[%s568_s5 + $0x28] sm:$0xff]   ;;  %v423_v17 = vld [vmem:[%s568_s5 + $0x20] sm:$0xff]  }
   0x6   :  { %367 = vmatmul.mubr.msk.bf16.vlgmr.msra.gmra.mxu0 %vm38_vm2, %v29_v5  ;;  %v424_v18 = vld [vmem:[%s568_s5 + $0x18] sm:$0xff]   ;;  %v324_v19 = vld [vmem:[%s569_s2] ss:$0 sm:$0xff]  ;;  %v425_v29 = vld [vmem:[%s568_s5 + $0x10] sm:$0xff]  }
   0x7   :  { %406 = vmatprep.mubr.msk.bf16.mxu0 %vm429_vm1, %v428_v0  ;;  %373 = vmatpush3.bf16.msra.mxu1 %v413_v7  ;;  %v426_v30 = vld [vmem:[%s568_s5 + $0x8] sm:$0xff]   ;;  %v427_v31 = vld [vmem:[%s568_s5] sm:$0xff]  }
   0x8   :  { %374 = vmatprep.subr.bf16.mxu1 %v428_v0  ;;  %391 = vmatpush3.bf16.msra.mxu0 %v420_v14  ;;  %v326_v32 = vld [vmem:[%s570_s4] ss:$0 sm:$0xff] }
   0x9   :  { %392 = vmatprep.subr.bf16.mxu0 %v428_v0  ;;  %v335_v42 = vld [vmem:[%s571_s6] ss:$0 sm:$0xff] }
   0xb   :  { %375 = vmatpush3.bf16.msra.mxu1 %v414_v8 }
   0xc   :  { %376 = vmatprep.subr.bf16.mxu1 %v428_v0  ;;  %393 = vmatpush3.bf16.msra.mxu0 %v421_v15 }
   0xd   :  { %394 = vmatprep.subr.bf16.mxu0 %v428_v0 }
   0xf   :  { %377 = vmatpush3.bf16.msra.mxu1 %v415_v9 }
  0x10   :  { %378 = vmatprep.subr.bf16.mxu1 %v428_v0  ;;  %395 = vmatpush3.bf16.msra.mxu0 %v422_v16 }
  0x11   :  { %396 = vmatprep.subr.bf16.mxu0 %v428_v0 }
  0x13   :  { %379 = vmatpush3.bf16.msra.mxu1 %v416_v10 }
  0x14   :  { %380 = vmatprep.subr.bf16.mxu1 %v428_v0  ;;  %397 = vmatpush3.bf16.msra.mxu0 %v423_v17 }
  0x15   :  { %398 = vmatprep.subr.bf16.mxu0 %v428_v0 }
  0x17   :  { %381 = vmatpush3.bf16.msra.mxu1 %v417_v11 }
  0x18   :  { %382 = vmatprep.subr.bf16.mxu1 %v428_v0  ;;  %399 = vmatpush3.bf16.msra.mxu0 %v424_v18 }
  0x19   :  { %400 = vmatprep.subr.bf16.mxu0 %v428_v0 }
  0x1b   :  { %383 = vmatpush3.bf16.msra.mxu1 %v418_v12 }
  0x1c   :  { %384 = vmatprep.subr.bf16.mxu1 %v428_v0  ;;  %401 = vmatpush3.bf16.msra.mxu0 %v425_v29 }
  0x1d   :  { %402 = vmatprep.subr.bf16.mxu0 %v428_v0 }
  0x1f   :  { %385 = vmatpush3.bf16.msra.mxu1 %v419_v13 }
  0x20   :  { %403 = vmatpush3.bf16.msra.mxu0 %v426_v30 }
  0x21   :  { %404 = vmatprep.subr.bf16.mxu0 %v428_v0 }
  0x24   :  { %405 = vmatpush3.bf16.msra.mxu0 %v427_v31 }
  0xc6   :  { %v80_v20 = vpop.f32.mrf.mxu0 }
  0xc7   :  { %v81_v22 = vadd.f32 %v324_v19, %v80_v20 }
  0xc8   :  { %v368_v21 = vpop.f32.mrf.mxu0 }
  0xc9   :  { %v87_v26 = vmax.f32 %v81_v22, 0.0 }
  0xca   :  { %v83_v23 = vpop.f32.mrf.mxu0 }
  0xcb   :  { %v84_v24 = vadd.f32 %v324_v19, %v83_v23 }
  0xcc   :  { %v369_v25 = vpop.f32.mrf.mxu0 }
  0xcd   :  { %v88_v27 = vmax.f32 %v84_v24, 0.0 }
  0xcf   :  { %v89_v28 = vpack.c.bf16 %v88_v27, %v87_v26 }
  0xd1   :  { %387 = vmatmul.mubr.bf16.vlgmr.msra.gmra.mxu1 %v89_v28 }
 0x191   :  { %v195_v33 = vpop.f32.mrf.mxu1 }
 0x192   :  { %v196_v35 = vadd.f32 %v326_v32, %v195_v33 }
 0x193   :  { %v388_v34 = vpop.f32.mrf.mxu1 }
 0x194   :  { %v202_v39 = vmax.f32 %v196_v35, 0.0 }
 0x195   :  { %v198_v36 = vpop.f32.mrf.mxu1 }
 0x196   :  { %v199_v37 = vadd.f32 %v326_v32, %v198_v36 }
 0x197   :  { %v389_v38 = vpop.f32.mrf.mxu1 }
 0x198   :  { %v203_v40 = vmax.f32 %v199_v37, 0.0 }
 0x19a   :  { %v204_v41 = vpack.c.bf16 %v203_v40, %v202_v39 }
 0x19c   :  { %407 = vmatmul.mubr.bf16.vlgmr.msra.gmra.mxu0 %v204_v41 }
 0x25c   :  { %v310_v43 = vpop.f32.mrf.mxu0 }
 0x25d   :  { %v311_v44 = vadd.f32 %v335_v42, %v310_v43 }
 0x25e   :  { %v408_v45 = vpop.f32.mrf.mxu0 }
 0x25f   :  { %318 = vst.msk [vmem:[%s572_s7] sm:$0xff] %vm317_vm3, %v311_v44 }
 0x260   :  { %v313_v46 = vpop.f32.mrf.mxu0 }
 0x261   :  { %v314_v47 = vadd.f32 %v335_v42, %v313_v46 }
 0x262   :  { %v409_v48 = vpop.f32.mrf.mxu0 }
 0x263   :  { %319 = vst.msk [vmem:[%s572_s7 + $0x8] sm:$0xff] %vm317_vm3, %v314_v47 }

</bundles_post_ra>
